<compile_context>
chip_gen: v6e
topology: v6e:2x2x1
jax: 0.10.0
libtpu: 0.0.40
codegen_flags: <defaults>
</compile_context>

<pallas_src>
import jax
import jax.numpy as jnp
from jax.experimental import pallas as pl
from jax.experimental.pallas import tpu as pltpu


def _pad_crop_kernel(x_ref, o_ref):
    # Copy the leading columns of the input block into the output block.
    # Row-only tiling : in block (rows, in_cols >= L_out), out block (rows, L_out).
    # 2-D tiling      : in/out blocks are both (rows, col_tile) -> slice is a no-op.
    o_ref[...] = x_ref[:, : o_ref.shape[1]]


def _round_up(x: int, m: int) -> int:
    return ((x + m - 1) // m) * m


def _sublane_multiple(dtype) -> int:
    # f32 -> 8, bf16 -> 16, int8/fp8 -> 32 (sub-32-bit dtypes pack along sublanes).
    return max(8, 32 // jnp.dtype(dtype).itemsize)


def _num_tensorcores() -> int:
    """Best-effort TensorCore-per-chip query; defaults to 1 (safe everywhere)."""
    try:
        info = pltpu.get_tpu_info()
        for attr in ("num_cores", "num_tensorcores", "tensorcores_per_chip", "core_count"):
            v = getattr(info, attr, None)
            if v:
                return max(1, int(v))
    except Exception:
        pass
    try:
        v = getattr(jax.devices()[0], "num_cores", None)
        if v:
            return max(1, int(v))
    except Exception:
        pass
    return 1


def _vmem_limit_bytes(block_bytes: int) -> int:
    """Double-buffered in+out blocks plus slack, capped below physical VMEM."""
    cap = 48 * 1024 * 1024  # conservative: leaves headroom on v7x's 64 MiB VMEM
    try:
        vmem = int(getattr(pltpu.get_tpu_info(), "vmem_capacity_bytes", 0) or 0)
        if vmem > 0:
            cap = max(16 * 1024 * 1024, vmem - 16 * 1024 * 1024)
    except Exception:
        pass
    want = 2 * block_bytes + (1 << 20)
    return int(max(16 * 1024 * 1024, min(cap, want)))


def pad_forward(x: jax.Array, pad_size: int, *,
                min_kernel_bytes: int = 2 * 1024 * 1024,
                max_block_bytes: int = 8 * 1024 * 1024) -> jax.Array:
    """Equivalent of Pad(pad_size).forward(x) for an (N, C, L) tensor."""
    if pad_size == 0:
        return x
    if pad_size < 0:
        raise ValueError(f"pad_size must be >= 0, got {pad_size}")

    N, C, L = x.shape
    L_out = L - pad_size
    if L_out <= 0:
        raise ValueError(f"pad_size={pad_size} must be smaller than temporal length L={L}")

    itemsize = jnp.dtype(x.dtype).itemsize

    # Small-input bypass: zero-FLOP crop, let XLA fuse the slice into the consumer.
    # TODO(synk): in a full model, fold the crop into the downstream kernel's in_spec.
    if N * C * L * itemsize < min_kernel_bytes:
        return x[:, :, :L_out]

    NC = N * C
    x2 = x.reshape(NC, L)
    sub = _sublane_multiple(x.dtype)
    num_cores = _num_tensorcores()

    # Only read the columns we need, rounded up to the lane boundary; full rows
    # only when the rounding would exceed L (full-dim blocks are always legal).
    in_cols = min(L, _round_up(L_out, 128))

    if sub * in_cols * itemsize <= max_block_bytes:
        # ---- Row-only tiling: one column block covering all needed columns ----
        in_col_tile, out_col_tile, n_col_blocks = in_cols, L_out, 1
        target_bytes = min(max_block_bytes,
                           2 * 1024 * 1024 if num_cores > 1 else 6 * 1024 * 1024)
        if NC <= sub:
            row_tile = NC  # equals the full array dim -> always a legal block shape
        else:
            bytes_per_row = max(1, in_cols * itemsize)
            rows_fit = max(sub, (target_bytes // bytes_per_row) // sub * sub)
            rows_fit = min(rows_fit, _round_up(NC, sub))
            if num_cores > 1:
                # Balanced step count (multiple of the TC count) for megacore sharding.
                steps = max(num_cores, _round_up(pl.cdiv(NC, rows_fit), num_cores))
                row_tile = max(sub, _round_up(pl.cdiv(NC, steps), sub))
            else:
                # Single TC: grid is a serial loop; biggest block that fits the target.
                row_tile = rows_fit
    else:
        # ---- 2-D tiling (rows x 128-aligned column chunks) for very long L ----
        col_tile = max(128, (max_block_bytes // (sub * itemsize)) // 128 * 128)
        col_tile = min(col_tile, _round_up(L_out, 128))
        in_col_tile = out_col_tile = col_tile
        n_col_blocks = pl.cdiv(L_out, col_tile)
        row_tile = NC if NC <= sub else sub

    grid = (pl.cdiv(NC, row_tile), n_col_blocks)
    block_bytes = row_tile * (in_col_tile + out_col_tile) * itemsize
    read_cols = min(L, n_col_blocks * in_col_tile)

    out2 = pl.pallas_call(
        _pad_crop_kernel,
        out_shape=jax.ShapeDtypeStruct((NC, L_out), x.dtype),
        grid_spec=pltpu.PrefetchScalarGridSpec(
            num_scalar_prefetch=0,
            grid=grid,
            in_specs=[pl.BlockSpec((row_tile, in_col_tile), lambda i, j: (i, j))],
            out_specs=pl.BlockSpec((row_tile, out_col_tile), lambda i, j: (i, j)),
        ),
        compiler_params=pltpu.CompilerParams(
            dimension_semantics=("parallel", "parallel"),
            vmem_limit_bytes=_vmem_limit_bytes(block_bytes),
        ),
        cost_estimate=pl.CostEstimate(
            flops=0,
            transcendentals=0,
            bytes_accessed=NC * (read_cols + L_out) * itemsize,
        ),
    )(x2)

    return out2.reshape(N, C, L_out)


if __name__ == "__main__":
    key = jax.random.PRNGKey(0)

    # Case 1: small TCN-style input (default path: fused XLA slice bypass).
    N, C, L = 2, 4, 16
    pad_size = 3
    x = jax.random.normal(key, (N, C, L), dtype=jnp.float32)
    y = jax.block_until_ready(pad_forward(x, pad_size))
    assert y.shape == (N, C, L - pad_size), y.shape
    assert jnp.array_equal(y, x[:, :, :-pad_size]), "mismatch (bypass path)"

    # pad_size == 0 identity path.
    assert jnp.array_equal(jax.block_until_ready(pad_forward(x, 0)), x)

    # Case 2: same small input forced through the Pallas kernel (unaligned L_out).
    y_k = jax.block_until_ready(pad_forward(x, pad_size, min_kernel_bytes=0))
    assert jnp.array_equal(y_k, x[:, :, :-pad_size]), "mismatch (kernel, unaligned)"

    # Case 3: lane-aligned L_out (cropped tail never DMA'd), forced kernel path.
    x_b = jax.random.normal(jax.random.PRNGKey(1), (2, 16, 256), dtype=jnp.float32)
    y_b = jax.block_until_ready(pad_forward(x_b, 128, min_kernel_bytes=0))
    assert jnp.array_equal(y_b, x_b[:, :, :-128]), "mismatch (kernel, aligned)"

    # Case 4: bf16 (16-row sublane packing), unaligned crop, forced kernel path.
    x_h = jax.random.normal(jax.random.PRNGKey(2), (2, 16, 200), dtype=jnp.bfloat16)
    y_h = jax.block_until_ready(pad_forward(x_h, 37, min_kernel_bytes=0))
    assert jnp.array_equal(y_h, x_h[:, :, :-37]), "mismatch (kernel, bf16)"

    # Case 5: force the 2-D (rows x 128-col) tiling fallback with a tiny block budget.
    x_c = jax.random.normal(jax.random.PRNGKey(3), (2, 8, 1024), dtype=jnp.float32)
    y_c = jax.block_until_ready(
        pad_forward(x_c, 100, min_kernel_bytes=0, max_block_bytes=4096))
    assert jnp.array_equal(y_c, x_c[:, :, :-100]), "mismatch (kernel, 2-D tiling)"

    print("KERNEL_OK")
</pallas_src>

<mosaic_0001>
module attributes {stable_mosaic.version = 11 : i64} {
  func.func @_pad_crop_kernel(%arg0: i32, %arg1: i32, %arg2: memref<8x16xf32, #tpu.memory_space<vmem>>, %arg3: memref<8x13xf32, #tpu.memory_space<vmem>>) attributes {dimension_semantics = [#tpu.dimension_semantics<parallel>, #tpu.dimension_semantics<parallel>], iteration_bounds = array<i64: 1, 1>, scalar_prefetch = 0 : i64, scratch_operands = 0 : i64, tpu.core_type = #tpu.core_type<tc>, window_params = [{transform_indices = @transform_0, window_bounds = array<i64: 8, 16>}, {transform_indices = @transform_1, window_bounds = array<i64: 8, 13>}]} {
    %c0 = arith.constant 0 : index
    %c0_0 = arith.constant 0 : index
    %0 = vector.load %arg2[%c0, %c0_0] : memref<8x16xf32, #tpu.memory_space<vmem>>, vector<8x13xf32>
    %c0_1 = arith.constant 0 : index
    %c0_2 = arith.constant 0 : index
    %1 = vector.load %arg3[%c0_1, %c0_2] : memref<8x13xf32, #tpu.memory_space<vmem>>, vector<8x13xf32>
    tpu.vector_store %arg3[%c0_1, %c0_2], %0 {strides = array<i32>} : memref<8x13xf32, #tpu.memory_space<vmem>>, vector<8x13xf32>,
    return
  }
  func.func @transform_0(%arg0: i32, %arg1: i32) -> (i32, i32) {
    %c0_i32 = arith.constant 0 : i32
    return %arg0, %arg1 : i32, i32
  }
  func.func @transform_1(%arg0: i32, %arg1: i32) -> (i32, i32) {
    %c0_i32 = arith.constant 0 : i32
    return %arg0, %arg1 : i32, i32
  }
}

</mosaic_0001>

<bundles_post_ra>
// kernel: tpu_custom_call.1
= control target key start
LH: loop header
LB: loop body
LE: loop exit
PB: predicated region body
PF: predicated region fallthrough
CT: control target
= control target key end

     0   :  { %6 = vsyncpa [#allocation3], 0  ;;  %s103_s0 = inlined_call_operand.hbm [shape: f32[8,16], index: 0, kind: input, shape index: {}]   ;;  %s104_s1 = inlined_call_operand.hbm [shape: f32[8,13], index: 1, kind: output, shape index: {}]  }
   0x1   :  { %7 = vsyncpa [#allocation4], 0  ;;  %s85_s6 = smov [#allocation2]  }
   0x2   :  { %s14_s7 = sshll.u32 %s85_s6, 4  ;;  %s15_s7 = int_to_ptr.vmem [resolvable:$true] %s14_s7 }
   0x3   :  { %s49_s8 = scalar_lea.vmem %s15_s7, 128  ;;  %p54_p1 = scmp.lt.s32.totalorder %s15_s7, %s15_s7 }
   0x4   :  { %p50_p0 = scmp.ne.s32.totalorder %s15_s7, %s49_s8  ;;  %p55_p2 = scmp.lt.s32.totalorder %s49_s8, %s49_s8 }
   0x6   :  { %p56_p3 = por %p55_p2, %p54_p1 }
   0x8   :  { %p57_p4 = pnand %p56_p3, %p50_p0 }
   0xa   :  { %60 = shalt.err (!%p57_p4)
}
   0xb   :  { %17 = dma.hbm_to_vmem [thread:$0]  %s103_s0, 128, %s15_s7, [#allocation3]  }
   0xc   :  { %81 = dma.done.wait [#allocation3], 128  }
   0xd   :  { %82 = vsyncadd [#allocation3], 4294967168  ;;  %s86_s11 = smov [#allocation5]   ;;  %vm22_vm0 = vcmask 105472   ;;  %v21_v0 = vld [vmem:[#allocation2] sm:$0xff] }
   0xe   :  { %s30_s12 = sshll.u32 %s86_s11, 4  ;;  %23 = vst.msk [vmem:[#allocation5] sm:$0xff] %vm22_vm0, %v21_v0  ;;  %s31_s12 = int_to_ptr.vmem [resolvable:$true] %s30_s12 }
   0xf   :  { %s61_s13 = scalar_lea.vmem %s31_s12, 128  ;;  %p66_p6 = scmp.lt.s32.totalorder %s31_s12, %s31_s12 }
  0x10   :  { %p62_p5 = scmp.ne.s32.totalorder %s31_s12, %s61_s13  ;;  %p67_p7 = scmp.lt.s32.totalorder %s61_s13, %s61_s13 }
  0x12   :  { %p68_p8 = por %p67_p7, %p66_p6 }
  0x14   :  { %p69_p9 = pnand %p68_p8, %p62_p5 }
  0x16   :  { %72 = shalt.err (!%p69_p9)
}
  0x17   :  { %33 = dma.vmem_to_hbm [thread:$0]  %s31_s12, 128, %s104_s1, [#allocation4]  }
  0x18   :  { %83 = dma.done.wait [#allocation4], 128  }
  0x19   :  { %84 = vsyncadd [#allocation4], 4294967168 }
  0x1a   :  { %37 = vsyncpa [#allocation3], 1 }
  0x1b   :  { %38 = vsyncpa [#allocation4], 1 }

</bundles_post_ra>
